<compile_context>
chip_gen: v7x
topology: tpu7x:2x2x1
jax: 0.10.0
libtpu: 0.0.40
codegen_flags: <defaults>
</compile_context>

<pallas_src>
import functools

import jax
import jax.numpy as jnp
from jax.experimental import pallas as pl
from jax.experimental.pallas import tpu as pltpu


def _round_up(x, m):
    return (x + m - 1) // m * m


def _ffn_kernel(x_ref, w1_ref, b1_ref, w2_ref, b2_ref, o_ref, acc_ref):
    kf = pl.program_id(1)

    @pl.when(kf == 0)
    def _():
        acc_ref[...] = jnp.zeros_like(acc_ref)

    # First linear slice: (bm, d_model) @ (d_model, bf) -> f32, + b1 slice, ReLU.
    h = jnp.dot(x_ref[...], w1_ref[...], preferred_element_type=jnp.float32)
    h = jnp.maximum(h + b1_ref[...], 0.0)
    # Dropout (eval mode) = identity.

    # Second linear slice accumulated into the resident f32 output accumulator:
    # (bm, bf) @ (bf, d_model) -> (bm, d_model).
    acc_ref[...] += jnp.dot(h.astype(w2_ref.dtype), w2_ref[...],
                            preferred_element_type=jnp.float32)

    @pl.when(kf == pl.num_programs(1) - 1)
    def _():
        # b2 added exactly once, in the finalize branch.
        o_ref[...] = (acc_ref[...] + b2_ref[...]).astype(o_ref.dtype)


@functools.partial(jax.jit, static_argnames=("block_m", "block_f"))
def feed_forward_block(x, w1, b1, w2, b2, *, block_m=256, block_f=512):
    """x: (batch, seq, d_model) -> (batch, seq, d_model).

    w1: (d_model, d_ff), b1: (d_ff,), w2: (d_ff, d_model), b2: (d_model,).
    block_m / block_f are re-derivable per TPU generation (smaller on v7x's
    64 MiB VMEM, larger on v5e/v6e's 128 MiB).
    """
    B, S, d_model = x.shape
    d_ff = w1.shape[1]
    M = B * S

    # ---- tile selection (MXU / lane friendly) --------------------------------
    d_model_p = _round_up(d_model, 128)          # lane-dense output last dim
    bm = min(block_m, _round_up(M, 16))          # sublane aligned (f32 & bf16)
    bf = min(block_f, _round_up(d_ff, 128))
    M_p = _round_up(M, bm)
    d_ff_p = _round_up(d_ff, bf)

    # ---- zero-pad to the tile grid (math-preserving) -------------------------
    x2 = x.reshape(M, d_model)
    x2 = jnp.pad(x2, ((0, M_p - M), (0, d_model_p - d_model)))
    w1p = jnp.pad(w1, ((0, d_model_p - d_model), (0, d_ff_p - d_ff)))
    b1p = jnp.pad(b1.reshape(1, d_ff), ((0, 0), (0, d_ff_p - d_ff)))
    w2p = jnp.pad(w2, ((0, d_ff_p - d_ff), (0, d_model_p - d_model)))
    b2p = jnp.pad(b2.reshape(1, d_model), ((0, 0), (0, d_model_p - d_model)))

    grid = (M_p // bm, d_ff_p // bf)

    # ---- VMEM budget / cost hints -------------------------------------------
    isz_x = jnp.dtype(x.dtype).itemsize
    isz_w = jnp.dtype(w1.dtype).itemsize
    live_bytes = (
        2 * bm * d_model_p * isz_x                                   # x tiles (dbl buf)
        + 2 * bm * d_model_p * isz_x                                 # out tiles (dbl buf)
        + 2 * (d_model_p * bf + bf * d_model_p + bf + d_model_p) * isz_w  # weight/bias tiles
        + bm * d_model_p * 4                                          # f32 accumulator
    )
    vmem_limit = int(min(max(live_bytes * 3 // 2, 32 * 1024 * 1024),
                         100 * 1024 * 1024))
    cost = pl.CostEstimate(
        flops=2 * 2 * M_p * d_model_p * d_ff_p,
        transcendentals=0,
        bytes_accessed=int(
            x2.size * isz_x + M_p * d_model_p * isz_x
            + (M_p // bm) * (w1p.size + w2p.size + b1p.size + b2p.size) * isz_w
        ),
    )

    out2d = pl.pallas_call(
        _ffn_kernel,
        out_shape=jax.ShapeDtypeStruct((M_p, d_model_p), x.dtype),
        grid_spec=pltpu.PrefetchScalarGridSpec(
            num_scalar_prefetch=0,
            grid=grid,
            in_specs=[
                pl.BlockSpec((bm, d_model_p), lambda i, k: (i, 0)),   # x tile
                pl.BlockSpec((d_model_p, bf), lambda i, k: (0, k)),   # W1 slice
                pl.BlockSpec((1, bf), lambda i, k: (0, k)),           # b1 slice
                pl.BlockSpec((bf, d_model_p), lambda i, k: (k, 0)),   # W2 slice
                pl.BlockSpec((1, d_model_p), lambda i, k: (0, 0)),    # b2
            ],
            out_specs=pl.BlockSpec((bm, d_model_p), lambda i, k: (i, 0)),
            scratch_shapes=[pltpu.VMEM((bm, d_model_p), jnp.float32)],
        ),
        compiler_params=pltpu.CompilerParams(
            dimension_semantics=("parallel", "arbitrary"),
            vmem_limit_bytes=vmem_limit,
        ),
        cost_estimate=cost,
    )(x2, w1p, b1p, w2p, b2p)

    return out2d[:M, :d_model].reshape(B, S, d_model)


def init_params(key, d_model, d_ff, dtype=jnp.float32):
    """Deterministic init matching nn.Linear's U(-1/sqrt(fan_in), 1/sqrt(fan_in))."""
    k1, k2, k3, k4 = jax.random.split(key, 4)
    bound1 = 1.0 / float(d_model) ** 0.5
    bound2 = 1.0 / float(d_ff) ** 0.5
    # Stored already-transposed: (in, out) so the kernel does x @ W.
    w1 = jax.random.uniform(k1, (d_model, d_ff), dtype, -bound1, bound1)
    b1 = jax.random.uniform(k2, (d_ff,), dtype, -bound1, bound1)
    w2 = jax.random.uniform(k3, (d_ff, d_model), dtype, -bound2, bound2)
    b2 = jax.random.uniform(k4, (d_model,), dtype, -bound2, bound2)
    return w1, b1, w2, b2


def _reference(x, w1, b1, w2, b2):
    """Pure-JAX f32 reference (dropout identity in eval mode)."""
    xf = x.astype(jnp.float32)
    h = jnp.maximum(
        xf @ w1.astype(jnp.float32) + b1.astype(jnp.float32), 0.0)
    return h @ w2.astype(jnp.float32) + b2.astype(jnp.float32)


def _check(out, ref, tol):
    err = float(jnp.max(jnp.abs(out.astype(jnp.float32) - ref))
                / (jnp.max(jnp.abs(ref)) + 1e-6))
    assert err < tol, f"mismatch vs reference: rel err {err} >= {tol}"


if __name__ == "__main__":
    key = jax.random.PRNGKey(0)

    # --- case 1: lane-aligned shapes, f32, multi-tile grid over both axes ----
    B, S, d_model, d_ff = 2, 64, 128, 256
    kx, kp, key = jax.random.split(key, 3)
    x = jax.random.normal(kx, (B, S, d_model), jnp.float32)
    w1, b1, w2, b2 = init_params(kp, d_model, d_ff, jnp.float32)
    out = feed_forward_block(x, w1, b1, w2, b2, block_m=64, block_f=128)
    out = jax.block_until_ready(out)
    assert out.shape == (B, S, d_model)
    _check(out, _reference(x, w1, b1, w2, b2), tol=5e-3)

    # --- case 2: ragged/small shapes (exercises padding path), bf16 params ---
    B2, S2, dm2, dff2 = 2, 8, 32, 96
    kx2, kp2 = jax.random.split(key)
    x2 = jax.random.normal(kx2, (B2, S2, dm2), jnp.float32).astype(jnp.bfloat16)
    p2 = init_params(kp2, dm2, dff2, jnp.bfloat16)
    out2 = feed_forward_block(x2, *p2)
    out2 = jax.block_until_ready(out2)
    assert out2.shape == (B2, S2, dm2)
    _check(out2, _reference(x2, *p2), tol=5e-2)

    print("KERNEL_OK")
</pallas_src>

<mosaic_0001>
module attributes {stable_mosaic.version = 11 : i64} {
  func.func @_ffn_kernel(%arg0: i32, %arg1: i32, %arg2: memref<64x128xf32, #tpu.memory_space<vmem>>, %arg3: memref<128x128xf32, #tpu.memory_space<vmem>>, %arg4: memref<1x128xf32, #tpu.memory_space<vmem>>, %arg5: memref<128x128xf32, #tpu.memory_space<vmem>>, %arg6: memref<1x128xf32, #tpu.memory_space<vmem>>, %arg7: memref<64x128xf32, #tpu.memory_space<vmem>>, %arg8: memref<64x128xf32, #tpu.memory_space<vmem>>) attributes {dimension_semantics = [#tpu.dimension_semantics<parallel>, #tpu.dimension_semantics<arbitrary>], iteration_bounds = array<i64: 2, 2>, scalar_prefetch = 0 : i64, scratch_operands = 1 : i64, tpu.core_type = #tpu.core_type<tc>, window_params = [{transform_indices = @transform_0, window_bounds = array<i64: 64, 128>}, {transform_indices = @transform_1, window_bounds = array<i64: 128, 128>}, {transform_indices = @transform_2, window_bounds = array<i64: 1, 128>}, {transform_indices = @transform_3, window_bounds = array<i64: 128, 128>}, {pipeline_mode = #tpu.pipeline_mode<synchronous>, transform_indices = @transform_4, window_bounds = array<i64: 1, 128>}, {transform_indices = @transform_5, window_bounds = array<i64: 64, 128>}]} {
    %c0_i32 = arith.constant 0 : i32
    %0 = arith.cmpi eq, %arg1, %c0_i32 : i32
    %1 = arith.extui %0 : i1 to i32
    %c0_i32_0 = arith.constant 0 : i32
    %2 = arith.cmpi ne, %1, %c0_i32_0 : i32
    scf.if %2 {
      %cst_15 = arith.constant 0.000000e+00 : f32
      %19 = vector.broadcast %cst_15 : f32 to vector<64x128xf32>
      %c0_16 = arith.constant 0 : index
      %c0_17 = arith.constant 0 : index
      %20 = vector.load %arg8[%c0_16, %c0_17] : memref<64x128xf32, #tpu.memory_space<vmem>>, vector<64x128xf32>
      tpu.vector_store %arg8[%c0_16, %c0_17], %19 {strides = array<i32>} : memref<64x128xf32, #tpu.memory_space<vmem>>, vector<64x128xf32>,
    } else {
    }
    %c0 = arith.constant 0 : index
    %c0_1 = arith.constant 0 : index
    %3 = vector.load %arg2[%c0, %c0_1] : memref<64x128xf32, #tpu.memory_space<vmem>>, vector<64x128xf32>
    %c0_2 = arith.constant 0 : index
    %c0_3 = arith.constant 0 : index
    %4 = vector.load %arg3[%c0_2, %c0_3] : memref<128x128xf32, #tpu.memory_space<vmem>>, vector<128x128xf32>
    %cst = arith.constant dense<0.000000e+00> : vector<64x128xf32>
    %5 = tpu.matmul %3, %4, %cst {dimension_numbers = #tpu.dot_dimension_numbers<[1], [0], [0], [1], [0, 0, 1, 1], [], []>} : vector<64x128xf32>, vector<128x128xf32>, vector<64x128xf32> -> vector<64x128xf32>
    %c0_4 = arith.constant 0 : index
    %c0_5 = arith.constant 0 : index
    %6 = vector.load %arg4[%c0_4, %c0_5] : memref<1x128xf32, #tpu.memory_space<vmem>>, vector<1x128xf32>
    %7 = vector.broadcast %6 : vector<1x128xf32> to vector<64x128xf32>
    %8 = arith.addf %5, %7 : vector<64x128xf32>
    %cst_6 = arith.constant 0.000000e+00 : f32
    %9 = vector.broadcast %cst_6 : f32 to vector<64x128xf32>
    %10 = arith.maximumf %8, %9 : vector<64x128xf32>
    %c0_7 = arith.constant 0 : index
    %c0_8 = arith.constant 0 : index
    %11 = vector.load %arg8[%c0_7, %c0_8] : memref<64x128xf32, #tpu.memory_space<vmem>>, vector<64x128xf32>
    %c0_9 = arith.constant 0 : index
    %c0_10 = arith.constant 0 : index
    %12 = vector.load %arg5[%c0_9, %c0_10] : memref<128x128xf32, #tpu.memory_space<vmem>>, vector<128x128xf32>
    %cst_11 = arith.constant dense<0.000000e+00> : vector<64x128xf32>
    %13 = tpu.matmul %10, %12, %cst_11 {dimension_numbers = #tpu.dot_dimension_numbers<[1], [0], [0], [1], [0, 0, 1, 1], [], []>} : vector<64x128xf32>, vector<128x128xf32>, vector<64x128xf32> -> vector<64x128xf32>
    %14 = arith.addf %11, %13 : vector<64x128xf32>
    %c0_12 = arith.constant 0 : index
    %c0_13 = arith.constant 0 : index
    %15 = vector.load %arg8[%c0_12, %c0_13] : memref<64x128xf32, #tpu.memory_space<vmem>>, vector<64x128xf32>
    tpu.vector_store %arg8[%c0_12, %c0_13], %14 {strides = array<i32>} : memref<64x128xf32, #tpu.memory_space<vmem>>, vector<64x128xf32>,
    %c1_i32 = arith.constant 1 : i32
    %16 = arith.cmpi eq, %arg1, %c1_i32 : i32
    %17 = arith.extui %16 : i1 to i32
    %c0_i32_14 = arith.constant 0 : i32
    %18 = arith.cmpi ne, %17, %c0_i32_14 : i32
    scf.if %18 {
      %c0_15 = arith.constant 0 : index
      %c0_16 = arith.constant 0 : index
      %19 = vector.load %arg8[%c0_15, %c0_16] : memref<64x128xf32, #tpu.memory_space<vmem>>, vector<64x128xf32>
      %c0_17 = arith.constant 0 : index
      %c0_18 = arith.constant 0 : index
      %20 = vector.load %arg6[%c0_17, %c0_18] : memref<1x128xf32, #tpu.memory_space<vmem>>, vector<1x128xf32>
      %21 = vector.broadcast %20 : vector<1x128xf32> to vector<64x128xf32>
      %22 = arith.addf %19, %21 : vector<64x128xf32>
      %c0_19 = arith.constant 0 : index
      %c0_20 = arith.constant 0 : index
      %23 = vector.load %arg7[%c0_19, %c0_20] : memref<64x128xf32, #tpu.memory_space<vmem>>, vector<64x128xf32>
      tpu.vector_store %arg7[%c0_19, %c0_20], %22 {strides = array<i32>} : memref<64x128xf32, #tpu.memory_space<vmem>>, vector<64x128xf32>,
    } else {
    }
    return
  }
  func.func @transform_0(%arg0: i32, %arg1: i32) -> (i32, i32) {
    %c0_i32 = arith.constant 0 : i32
    %c0_i32_0 = arith.constant 0 : i32
    return %arg0, %c0_i32 : i32, i32
  }
  func.func @transform_1(%arg0: i32, %arg1: i32) -> (i32, i32) {
    %c0_i32 = arith.constant 0 : i32
    %c0_i32_0 = arith.constant 0 : i32
    return %c0_i32, %arg1 : i32, i32
  }
  func.func @transform_2(%arg0: i32, %arg1: i32) -> (i32, i32) {
    %c0_i32 = arith.constant 0 : i32
    %c0_i32_0 = arith.constant 0 : i32
    return %c0_i32, %arg1 : i32, i32
  }
  func.func @transform_3(%arg0: i32, %arg1: i32) -> (i32, i32) {
    %c0_i32 = arith.constant 0 : i32
    %c0_i32_0 = arith.constant 0 : i32
    return %arg1, %c0_i32 : i32, i32
  }
  func.func @transform_4(%arg0: i32, %arg1: i32) -> (i32, i32) {
    %c0_i32 = arith.constant 0 : i32
    %c0_i32_0 = arith.constant 0 : i32
    %c0_i32_1 = arith.constant 0 : i32
    return %c0_i32, %c0_i32_0 : i32, i32
  }
  func.func @transform_5(%arg0: i32, %arg1: i32) -> (i32, i32) {
    %c0_i32 = arith.constant 0 : i32
    %c0_i32_0 = arith.constant 0 : i32
    return %arg0, %c0_i32 : i32, i32
  }
}

</mosaic_0001>

<bundles_post_ra>
// kernel: feed_forward_block.1
= control target key start
LH: loop header
LB: loop body
LE: loop exit
PB: predicated region body
PF: predicated region fallthrough
CT: control target
= control target key end

     0   :  { %s1872_s0 = inlined_call_operand.hbm [shape: f32[128,128], index: 0, kind: input, shape index: {}]   ;;  %s1873_s1 = inlined_call_operand.hbm [shape: f32[128,256], index: 1, kind: input, shape index: {}]   ;;  %s1874_s2 = inlined_call_operand.vmem [shape: f32[1,256], index: 2, kind: input, shape index: {}]   ;;  %s1875_s3 = inlined_call_operand.hbm [shape: f32[256,128], index: 3, kind: input, shape index: {}]   ;;  %s1876_s4 = inlined_call_operand.vmem [shape: f32[1,128], index: 4, kind: input, shape index: {}]   ;;  %s1877_s5 = inlined_call_operand.hbm [shape: f32[128,128], index: 5, kind: output, shape index: {}]  }
   0x1   :  { %1894 = sst [smem:[#allocation21_spill]] %s1873_s1 }
   0x2   :  { %1895 = sst [smem:[#allocation22_spill]] %s1876_s4 }
   0x3   :  { %1896 = sst [smem:[#allocation23_spill]] %s1877_s5 }
   0x4   :  { %10 = vsyncpa [#allocation4], 0 }
   0x5   :  { %12 = vsyncpa [#allocation4 + $0x1], 0 }
   0x6   :  { %13 = vsyncpa [#allocation7], 0 }
   0x7   :  { %15 = vsyncpa [#allocation7 + $0x1], 0 }
   0x8   :  { %16 = vsyncpa [#allocation5], 0 }
   0x9   :  { %18 = vsyncpa [#allocation5 + $0x1], 0  ;;  %s1439_s18 = smov 0   ;;  %s1441_s19 = smov 0  }
   0xa   :  { %s1443_s20 = smov 0   ;;  %s1445_s21 = smov 0  }
   0xb   :  { %s1447_s22 = smov 0   ;;  %s1449_s23 = smov 0  }
   0xc   :  { %s1451_s24 = smov 0   ;;  %s1453_s25 = smov 0  }
   0xd   :  { %s1455_s26 = smov 0   ;;  %s1457_s27 = smov 0  }
   0xe   :  { %s1459_s28 = smov 0  }
   0xf LB: > { %1897 = sst [smem:[#allocation13_spill]] %s1365_s20  ;;  %s33_s29 = sadd.s32 1, %s1389_s26  ;;  %s1397_s28 = sphi %s1459_s28, %s24_s28   ;;  %s1393_s27 = sphi %s1457_s27, %s1937_s27   ;;  %s1389_s26 = sphi %s1455_s26, %s1943_s26   ;;  %s1385_s25 = sphi %s1453_s25, %s1935_s25   ;;  %s1381_s24 = sphi %s1451_s24, %s1942_s24   ;;  %s1377_s23 = sphi %s1449_s23, %s1934_s23   ;;  %s1373_s22 = sphi %s1447_s22, %s1941_s22   ;;  %s1369_s21 = sphi %s1445_s21, %s1940_s21   ;;  %s1365_s20 = sphi %s1443_s20, %s1932_s20   ;;  %s1361_s19 = sphi %s1441_s19, %s1939_s19   ;;  %s1357_s18 = sphi %s1439_s18, %s1938_s18  }
  0x10   : > { %1898 = sst [smem:[#allocation14_spill]] %s1377_s23  ;;  %p1880_p0 = scmp.eq.s32.totalorder %s1397_s28, 0 }
  0x11   : > { %1899 = sst [smem:[#allocation15_spill]] %s1385_s25  ;;  %p1496_p1 = scmp.ge.s32.totalorder %s33_s29, 2 }
  0x12   : > { %1900 = sst [smem:[#allocation16_spill]] %s1393_s27  ;;  %s69_s6 = sadd.s32 1, %s1365_s20 }
  0x13   : > { %p76_p2 = scmp.ne.s32.totalorder %s1365_s20, %s1361_s19  ;;  %s1945_s29 = smov (%p1496_p1, %s33_s29), 0 }
  0x14   : > { %1902 = sst [smem:[#allocation17_spill]] %s1945_s29  ;;  %s66_s7 = ssub.s32 %s1389_s26, %s1945_s29 }
  0x15   : > { %p78_p4 = por %p76_p2, %p1880_p0  ;;  %p1879_p5 = scmp.lt.s32.totalorder %s1397_s28, 4 }
  0x16   : > { %p67_p6 = scmp.eq.s32.totalorder %s66_s7, 0  ;;  %s229_s8 = sand.u32 1, %s1397_s28  }
  0x17   : > { %s231_s10 = sand.u32 1, %s1365_s20   ;;  %s842_s12 = sshll.u32 %s1389_s26, 7 }
  0x18   : > { %s1516_s9 = scalar_select %p67_p6, %s1365_s20, %s69_s6  }
  0x19   : > { %s1519_s11 = sshll.u32 %s231_s10, 7  ;;  %s1904_s1 = sld [smem:[#allocation21_spill]] }
  0x1a   : > { %1903 = sst [smem:[#allocation18_spill]] %s1516_s9  ;;  %s233_s16 = scalar_lea.vmem [#allocation6], %s1519_s11 }
  0x1b   : > { %s239_s17 = sshll.u32 %s233_s16, 4  ;;  %p1530_p7 = pnand %p1879_p5, %p78_p4  ;;  %s1534_s17 = int_to_ptr.vmem [resolvable:$true] %s239_s17 }
  0x1c   : > { %s1537_s7 = scalar_lea.sflag [#allocation7], %s229_s8 }
  0x1d   : > { %p1883_p10 = pneg %p1530_p7 }
  0x1f   : > { %s1525_s15 = scalar_lea.hbm %s1904_s1, %s842_s12  ;;  %s1186_s14 = scalar_lea.hbm %s1904_s1, 4096 }
  0x20   : > { %s1181_s10 = scalar_lea.hbm %s1525_s15, 2048  ;;  %p1187_p13 = scmp.lt.u32.totalorder %s1525_s15, %s1904_s1 }
  0x21   : > { %p1182_p9 = scmp.ne.s32.totalorder %s1525_s15, %s1181_s10  ;;  %p1188_p2 = scmp.lt.u32.totalorder %s1186_s14, %s1181_s10 }
  0x22   : > { %p1190_p6 = scmp.lt.u32.totalorder %s1181_s10, %s1525_s15 }
  0x23   : > { %p1184_p11 = pnand %p1883_p10, %p1182_p9  ;;  %p1189_p4 = por %p1188_p2, %p1187_p13 }
  0x25   : > { %p1185_p12 = pneg %p1184_p11  ;;  %p1191_p5 = por %p1190_p6, %p1189_p4 }
  0x27   : > { %p1192_p3 = pnand %p1191_p5, %p1185_p12 }
  0x29   : > { %1195 = shalt.err (!%p1192_p3)
}
  0x2a   : > { %s1196_s8 = scalar_lea.vmem %s1534_s17, 2048  ;;  %s1399_s12 = smov [#allocation6]  }
  0x2b   : > { %p1197_p9 = scmp.ne.s32.totalorder %s1534_s17, %s1196_s8  ;;  %s1201_s13 = sshll.u32 %s1399_s12, 4  ;;  %s1202_s13 = int_to_ptr.vmem [resolvable:$false] %s1201_s13 }
  0x2c   : > { %s1203_s29 = scalar_lea.vmem %s1202_s13, 4096  ;;  %p1204_p8 = scmp.lt.s32.totalorder %s1534_s17, %s1202_s13 }
  0x2d   : > { %p1199_p11 = pnand %p1197_p9, %p1883_p10  ;;  %p1205_p13 = scmp.lt.s32.totalorder %s1203_s29, %s1196_s8 }
  0x2f   : > { %p1200_p0 = pneg %p1199_p11  ;;  %p1206_p2 = por %p1205_p13, %p1204_p8 }
  0x31   : > { %p1207_p4 = pnand %p1206_p2, %p1200_p0 }
  0x33   : > { %1210 = shalt.err (!%p1207_p4)
}
  0x34   : > { %s1400_s10 = smov 256   ;;  %s1881_s14 = smov 128  }
  0x35   : > { %s1884_s16 = smov 8   ;;  %p274_p0 = scmp.lt.s32.totalorder %s1397_s28, 5 }
  0x36   : > { %1077 = dma.hbm_to_vmem [thread:$0]  (!%p1530_p7), %s1525_s15, 2048, %s1534_s17, %s1537_s7, %s1400_s10, %s1881_s14, %s1884_s16  }
  0x37   : > { %p1906_p3 = scmp.ge.s32.totalorder %s1397_s28, 1  ;;  %s1575_s12 = sadd.s32 4294967295, %s1397_s28  }
  0x38   : > { %s835_s13 = sadd.s32 4294967294, %s1397_s28   ;;  %s36_s29 = sadd.s32 1, %s1393_s27 }
  0x39   : > { %p1570_p5 = pnand %p1906_p3, %p274_p0  ;;  %s43_s1 = sadd.s32 1, %s1377_s23 }
  0x3a   : > { %s1947_s29 = smov (!%p1496_p1, %s36_s29), %s1393_s27  ;;  %p50_p8 = scmp.ne.s32.totalorder %s1377_s23, %s1373_s22 }
  0x3b   : > { %s1907_s8 = scalar_select %p1570_p5, 1, 0 }
  0x3c   : > { %p56_p12 = scmp.ne.s32.totalorder %s1373_s22, %s1369_s21  ;;  %p38_p6 = scmp.ge.s32.totalorder %s1947_s29, 2 }
  0x3d   : > { %p57_p9 = scmp.eq.s32.totalorder %s1575_s12, 0  ;;  %p1908_p11 = scmp.eq.s32.totalorder %s1397_s28, 0 }
  0x3e   : > { %p179_p2 = scmp.eq.s32.totalorder %s1575_s12, 3  ;;  %s1949_s29 = smov (%p38_p6, %s1947_s29), 0 }
  0x3f   : > { %p1590_p13 = por %p1908_p11, %p50_p8  ;;  %1910 = sst [smem:[#allocation19_spill]] %s1949_s29 }
  0x40   : > { %p1600_p1 = por %p57_p9, %p56_p12  ;;  %p1912_p4 = scmp.ne.s32.totalorder %s1361_s19, %s1357_s18 }
  0x41   : > { %s40_s10 = ssub.s32 %s1393_s27, %s1949_s29  ;;  %p1613_p3 = por %p179_p2, %p50_p8 }
  0x42   : > { %s1911_s30 = scalar_select %p1600_p1, 1, 0 }
  0x43   : > { %p1607_p0 = por %p1912_p4, %p57_p9  ;;  %p41_p11 = scmp.eq.s32.totalorder %s40_s10, 0 }
  0x44   : > { %s1914_s14 = scalar_select %p1613_p3, 1, 0 }
  0x45   : > { %s1913_s17 = scalar_select %p1607_p0, 1, 0 }
  0x46   : > { %p185_p10 = scmp.eq.s32.totalorder %s835_s13, 3  ;;  %s208_s16 = sand.u32 1, %s1377_s23  }
  0x47   : > { %s860_s9 = sshll.u32 %s1393_s27, 10  ;;  %s838_s18 = sshll.u32 %s208_s16, 6 }
  0x48   : > { %s1620_s20 = scalar_select %p41_p11, %s1377_s23, %s43_s1  }
  0x49   : > { %p1625_p6 = por %p185_p10, %p56_p12  ;;  %s1632_s29 = scalar_lea.hbm %s1872_s0, %s860_s9 }
  0x4a   : > { %1915 = sst [smem:[#allocation20_spill]] %s1620_s20  ;;  %p1917_p8 = scmp.lt.s32.totalorder %s1397_s28, 4 }
  0x4b   : > { %s1916_s5 = scalar_select %p1625_p6, 1, 0 }
  0x4c   : > { %p1638_p9 = pnand %p1917_p8, %p1590_p13  ;;  %s212_s13 = scalar_lea.vmem [#allocation3], %s838_s18 }
  0x4d   : > { %s219_s10 = sshll.u32 %s212_s13, 4  ;;  %s1644_s27 = scalar_lea.sflag [#allocation4], %s208_s16  ;;  %s1642_s10 = int_to_ptr.vmem [resolvable:$true] %s219_s10 }
  0x4e   : > { %s1211_s4 = scalar_lea.hbm %s1632_s29, 1024  ;;  %p1213_p12 = pneg %p1638_p9 }
  0x4f   : > { %p1212_p10 = scmp.ne.s32.totalorder %s1632_s29, %s1211_s4  ;;  %s1216_s15 = scalar_lea.hbm %s1872_s0, 2048 }
  0x50   : > { %p1217_p13 = scmp.lt.u32.totalorder %s1632_s29, %s1872_s0  ;;  %p1218_p11 = scmp.lt.u32.totalorder %s1216_s15, %s1211_s4 }
  0x51   : > { %p1214_p2 = pnand %p1213_p12, %p1212_p10  ;;  %p1220_p6 = scmp.lt.u32.totalorder %s1211_s4, %s1632_s29 }
  0x52   : > { %p1219_p8 = por %p1218_p11, %p1217_p13 }
  0x53   : > { %p1215_p4 = pneg %p1214_p2 }
  0x54   : > { %p1221_p3 = por %p1220_p6, %p1219_p8 }
  0x56   : > { %p1222_p0 = pnand %p1221_p3, %p1215_p4 }
  0x58   : > { %1225 = shalt.err (!%p1222_p0)
}
  0x59   : > { %s1226_s16 = scalar_lea.vmem %s1642_s10, 1024  ;;  %s1403_s18 = smov [#allocation3]  }
  0x5a   : > { %p1227_p10 = scmp.ne.s32.totalorder %s1642_s10, %s1226_s16  ;;  %s1231_s13 = sshll.u32 %s1403_s18, 4  ;;  %s1232_s13 = int_to_ptr.vmem [resolvable:$false] %s1231_s13 }
  0x5b   : > { %s1233_s20 = scalar_lea.vmem %s1232_s13, 2048  ;;  %p1234_p5 = scmp.lt.s32.totalorder %s1642_s10, %s1232_s13 }
  0x5c   : > { %p1229_p2 = pnand %p1227_p10, %p1213_p12  ;;  %p1235_p13 = scmp.lt.s32.totalorder %s1233_s20, %s1226_s16 }
  0x5e   : > { %p1230_p1 = pneg %p1229_p2  ;;  %p1236_p11 = por %p1235_p13, %p1234_p5 }
  0x60   : > { %p1237_p6 = pnand %p1236_p11, %p1230_p1 }
  0x62   : > { %1240 = shalt.err (!%p1237_p6)
}
  0x63   : > { %s1919_s23 = smov 8   ;;  %s1920_s4 = smov 128  }
  0x64   : > { %1074 = dma.hbm_to_vmem [thread:$0]  (!%p1638_p9), %s1632_s29, 1024, %s1642_s10, %s1644_s27, %s1920_s4, %s1920_s4, %s1919_s23  }
  0x65   : > { %s861_s25 = sshll.u32 %s1389_s26, 11  ;;  %s259_s9 = scalar_lea.vmem [#allocation8], %s1519_s11 }
  0x66   : > { %s266_s15 = sshll.u32 %s259_s9, 4  ;;  %s1680_s13 = scalar_lea.hbm %s1875_s3, %s861_s25  ;;  %s1682_s15 = int_to_ptr.vmem [resolvable:$true] %s266_s15 }
  0x67   : > { %s1241_s1 = scalar_lea.hbm %s1680_s13, 2048  ;;  %p1921_p1 = pneg %p1530_p7 }
  0x68   : > { %p1242_p5 = scmp.ne.s32.totalorder %s1680_s13, %s1241_s1  ;;  %s1246_s29 = scalar_lea.hbm %s1875_s3, 4096 }
  0x69   : > { %p1247_p9 = scmp.lt.u32.totalorder %s1680_s13, %s1875_s3  ;;  %p1248_p12 = scmp.lt.u32.totalorder %s1246_s29, %s1241_s1 }
  0x6a   : > { %p1244_p0 = pnand %p1242_p5, %p1921_p1  ;;  %p1250_p8 = scmp.lt.u32.totalorder %s1241_s1, %s1680_s13 }
  0x6b   : > { %p1249_p4 = por %p1248_p12, %p1247_p9 }
  0x6c   : > { %p1245_p3 = pneg %p1244_p0 }
  0x6d   : > { %p1251_p10 = por %p1250_p8, %p1249_p4 }
  0x6f   : > { %p1252_p2 = pnand %p1251_p10, %p1245_p3 }
  0x71   : > { %1255 = shalt.err (!%p1252_p2)
}
  0x72   : > { %s1256_s25 = scalar_lea.vmem %s1682_s15, 2048  ;;  %p1922_p11 = pmov %p1921_p1 }
  0x73   : > { %p1257_p13 = scmp.ne.s32.totalorder %s1682_s15, %s1256_s25  ;;  %s1404_s9 = smov [#allocation8]  }
  0x74   : > { %s1261_s18 = sshll.u32 %s1404_s9, 4  ;;  %s1262_s18 = int_to_ptr.vmem [resolvable:$false] %s1261_s18 }
  0x75   : > { %p1259_p6 = pnand %p1257_p13, %p1922_p11  ;;  %s1263_s16 = scalar_lea.vmem %s1262_s18, 4096 }
  0x76   : > { %p1264_p1 = scmp.lt.s32.totalorder %s1682_s15, %s1262_s18  ;;  %p1265_p0 = scmp.lt.s32.totalorder %s1263_s16, %s1256_s25 }
  0x77   : > { %p1260_p5 = pneg %p1259_p6 }
  0x78   : > { %p1266_p9 = por %p1265_p0, %p1264_p1 }
  0x7a   : > { %p1267_p12 = pnand %p1266_p9, %p1260_p5 }
  0x7c   : > { %1270 = shalt.err (!%p1267_p12)
}
  0x7d   : > { %1080 = dma.hbm_to_vmem [thread:$0]  (!%p1530_p7), %s1680_s13, 2048, %s1682_s15, %s1537_s7, %s1920_s4, %s1920_s4, %s1919_s23  }
  0x7e   : > { %p1923_p3 = scmp.ne.s32.totalorder %s1907_s8, 0 }
  0x7f   : > { %s1714_s1 = sand.u32 (!%p1923_p3), 1, %s1373_s22   ;;  %p1924_p4 = scmp.ne.s32.totalorder (!%p1923_p3), %s1911_s30, 0 }
  0x80   : > { %278 = sbr.rel (%p1923_p3) target bundleno = 670 (0x29e), region = 40  ;;  %s847_s27 = sshll.u32 (!%p1923_p3), %s1714_s1, 6 }
  0x81   : > { %s281_s11 = scalar_lea.sflag (!%p1923_p3), [#allocation4], %s1714_s1  ;;  %s1718_s29 = scalar_lea.vmem (!%p1923_p3), [#allocation3], %s847_s27 }
  0x87   : > { %1344 = dma.done.wait (%p1924_p4), %s281_s11, 1024  }
  0x88   : > { %1346 = vsyncadd (%p1924_p4), %s281_s11, 4294966272  ;;  %s289_s6 = sand.u32 1, %s1575_s12   ;;  %s291_s7 = sand.u32 1, %s1361_s19  }
  0x89   : > { %s848_s8 = sshll.u32 %s291_s7, 7  ;;  %s290_s23 = scalar_lea.sflag [#allocation7], %s289_s6 }
  0x8a   : > { %s1726_s4 = scalar_lea.vmem [#allocation6], %s848_s8  ;;  %p1925_p7 = scmp.ne.s32.totalorder %s1913_s17, 0 }
  0x8c   : > { %1348 = dma.done.wait (%p1925_p7), %s290_s23, 4096  }
  0x8d   : > { %1350 = vsyncadd (%p1925_p7), %s290_s23, 4294963200  ;;  %p343_p8 = scmp.lt.s32.totalorder %s1381_s24, 1  ;;  %s1740_s10 = scalar_lea.vmem [#allocation8], %s848_s8 }
  0x8e   : > { %s1742_s20 = scalar_lea.vmem [#allocation9], %s847_s27  ;;  %p851_p10 = scmp.ne.s32.totalorder %s1381_s24, 0 }
  0x8f   : > { %s1734_s15 = scalar_select %p343_p8, %s1381_s24, 1 }
  0x90   : > { %351 = sbr.rel (%p851_p10) target bundleno = 151 (0x97), region = 56  ;;  %v1405_v0 = vmov (!%p851_p10), 0.0  }
  0x91   : > { %s345_s12 = scalar_lea.vmem %s1874_s2, %s1734_s15  ;;  %352 = vst [vmem:[#allocation2] sm:$0xff] (!%p851_p10), %v1405_v0  ;;  %353 = vst [vmem:[#allocation2 + $0x8] sm:$0xff] (!%p851_p10), %v1405_v0 }
  0x92   : > { %354 = vst [vmem:[#allocation2 + $0x10] sm:$0xff] (!%p851_p10), %v1405_v0  ;;  %355 = vst [vmem:[#allocation2 + $0x18] sm:$0xff] (!%p851_p10), %v1405_v0 }
  0x93   : > { %356 = vst [vmem:[#allocation2 + $0x20] sm:$0xff] (!%p851_p10), %v1405_v0  ;;  %357 = vst [vmem:[#allocation2 + $0x28] sm:$0xff] (!%p851_p10), %v1405_v0 }
  0x94   : > { %358 = vst [vmem:[#allocation2 + $0x30] sm:$0xff] (!%p851_p10), %v1405_v0  ;;  %359 = vst [vmem:[#allocation2 + $0x38] sm:$0xff] (!%p851_p10), %v1405_v0 }
  0x97 PF: > { %v368_v1 = vld [vmem:[%s1726_s4] sm:$0xff]  ;;  %v369_v2 = vld [vmem:[%s1726_s4 + $0x8] sm:$0xff]  ;;  %v370_v3 = vld [vmem:[%s1726_s4 + $0x10] sm:$0xff]  ;;  %p853_p2 = scmp.ne.s32.totalorder %s1381_s24, 1 }
  0x98   : > { %v999_v4 = vpack.c.bf16 %v369_v2, %v368_v1  ;;  %v371_v5 = vld [vmem:[%s1726_s4 + $0x18] sm:$0xff]  ;;  %v372_v7 = vld [vmem:[%s1726_s4 + $0x20] sm:$0xff]  ;;  %v373_v8 = vld [vmem:[%s1726_s4 + $0x28] sm:$0xff]  ;;  %s1926_s16 = sld [smem:[#allocation22_spill]] (!%p853_p2) }
  0x99   : > { %v1003_v6 = vpack.c.bf16 %v371_v5, %v370_v3  ;;  %v1007_v9 = vpack.c.bf16 %v373_v8, %v372_v7  ;;  %v360_v10 = vld [vmem:[%s1718_s29] sm:$0xff]  ;;  %v374_v11 = vld [vmem:[%s1726_s4 + $0x30] sm:$0xff]  ;;  %v375_v12 = vld [vmem:[%s1726_s4 + $0x38] sm:$0xff] }
  0x9a   : > { %1000 = vmatprep.subr.bf16.mxu0 %v999_v4  ;;  %943 = vmatprep.mubr.f32.mxu0 %v360_v10  ;;  %v512_v13 = vld [vmem:[%s1740_s10] sm:$0xff]  ;;  %v513_v14 = vld [vmem:[%s1740_s10 + $0x8] sm:$0xff]  ;;  %v514_v15 = vld [vmem:[%s1740_s10 + $0x10] sm:$0xff]  ;;  %v1011_v16 = vpack.c.bf16 %v375_v12, %v374_v11 }
  0x9b   : > { %1002 = vmatpush3.bf16.msra.mxu0 %v999_v4  ;;  %v376_v17 = vld [vmem:[%s1726_s4 + $0x40] sm:$0xff]  ;;  %v1031_v18 = vpack.c.bf16 %v513_v14, %v512_v13  ;;  %v515_v19 = vld [vmem:[%s1740_s10 + $0x18] sm:$0xff]  ;;  %v377_v20 = vld [vmem:[%s1726_s4 + $0x48] sm:$0xff] }
  0x9c   : > { %1004 = vmatprep.subr.bf16.mxu0 %v1003_v6  ;;  %v1035_v21 = vpack.c.bf16 %v515_v19, %v514_v15  ;;  %v516_v22 = vld [vmem:[%s1740_s10 + $0x20] sm:$0xff]  ;;  %v517_v23 = vld [vmem:[%s1740_s10 + $0x28] sm:$0xff]  ;;  %v1015_v24 = vpack.c.bf16 %v377_v20, %v376_v17  ;;  %v378_v25 = vld [vmem:[%s1726_s4 + $0x50] sm:$0xff] }
  0x9d   : > { %1032 = vmatprep.subr.bf16.mxu1 %v1031_v18  ;;  %v1039_v26 = vpack.c.bf16 %v517_v23, %v516_v22  ;;  %v379_v27 = vld [vmem:[%s1726_s4 + $0x58] sm:$0xff]  ;;  %v518_v28 = vld [vmem:[%s1740_s10 + $0x30] sm:$0xff]  ;;  %v380_v31 = vld [vmem:[%s1726_s4 + $0x60] sm:$0xff] }
  0x9e   : > { %1034 = vmatpush3.bf16.msra.mxu1 %v1031_v18  ;;  %v519_v29 = vld [vmem:[%s1740_s10 + $0x38] sm:$0xff]  ;;  %v1019_v30 = vpack.c.bf16 %v379_v27, %v378_v25  ;;  %v381_v33 = vld [vmem:[%s1726_s4 + $0x68] sm:$0xff]  ;;  %v520_v34 = vld [vmem:[%s1740_s10 + $0x40] sm:$0xff] }
  0x9f   : > { %1006 = vmatpush3.bf16.msra.mxu0 %v1003_v6  ;;  %1036 = vmatprep.subr.bf16.mxu1 %v1035_v21  ;;  %v1043_v32 = vpack.c.bf16 %v519_v29, %v518_v28  ;;  %v521_v35 = vld [vmem:[%s1740_s10 + $0x48] sm:$0xff]  ;;  %v1023_v36 = vpack.c.bf16 %v381_v33, %v380_v31  ;;  %v382_v37 = vld [vmem:[%s1726_s4 + $0x70] sm:$0xff]  ;;  %v383_v39 = vld [vmem:[%s1726_s4 + $0x78] sm:$0xff] }
  0xa0   : > { %1008 = vmatprep.subr.bf16.mxu0 %v1007_v9  ;;  %v1047_v38 = vpack.c.bf16 %v521_v35, %v520_v34  ;;  %v522_v40 = vld [vmem:[%s1740_s10 + $0x50] sm:$0xff]  ;;  %v523_v41 = vld [vmem:[%s1740_s10 + $0x58] sm:$0xff]  ;;  %v1027_v42 = vpack.c.bf16 %v383_v39, %v382_v37  ;;  %v524_v44 = vld [vmem:[%s1740_s10 + $0x60] sm:$0xff] }
  0xa1   : > { %v1051_v43 = vpack.c.bf16 %v523_v41, %v522_v40  ;;  %v525_v45 = vld [vmem:[%s1740_s10 + $0x68] sm:$0xff]  ;;  %v362_v48 = vld [vmem:[%s1718_s29 + $0x10] sm:$0xff]  ;;  %v363_v49 = vld [vmem:[%s1718_s29 + $0x18] sm:$0xff] }
  0xa2   : > { %1038 = vmatpush3.bf16.msra.mxu1 %v1035_v21  ;;  %v1055_v46 = vpack.c.bf16 %v525_v45, %v524_v44  ;;  %v361_v47 = vld [vmem:[%s1718_s29 + $0x8] sm:$0xff]  ;;  %v364_v50 = vld [vmem:[%s1718_s29 + $0x20] sm:$0xff]  ;;  %v366_v52 = vld [vmem:[%s1718_s29 + $0x30] sm:$0xff] }
  0xa3   : > { %1010 = vmatpush3.bf16.msra.mxu0 %v1007_v9  ;;  %1040 = vmatprep.subr.bf16.mxu1 %v1039_v26  ;;  %v365_v51 = vld [vmem:[%s1718_s29 + $0x28] sm:$0xff]  ;;  %v367_v53 = vld [vmem:[%s1718_s29 + $0x38] sm:$0xff]  ;;  %v526_v54 = vld [vmem:[%s1740_s10 + $0x70] sm:$0xff] }
  0xa4   : > { %1012 = vmatprep.subr.bf16.mxu0 %v1011_v16  ;;  %v527_v55 = vld [vmem:[%s1740_s10 + $0x78] sm:$0xff]  ;;  %v852_v57 = vld [vmem:[%s345_s12] ss:$0 sm:$0xff]  ;;  %v505_v18 = vld [vmem:[#allocation2 + $0x8] sm:$0xff] }
  0xa5   : > { %v1059_v56 = vpack.c.bf16 %v527_v55, %v526_v54  ;;  %v504_v19 = vld [vmem:[#allocation2] sm:$0xff]  ;;  %v506_v25 = vld [vmem:[#allocation2 + $0x10] sm:$0xff] }
  0xa6   : > { %1042 = vmatpush3.bf16.msra.mxu1 %v1039_v26  ;;  %v508_v31 = vld [vmem:[#allocation2 + $0x20] sm:$0xff]  ;;  %v510_v37 = vld [vmem:[#allocation2 + $0x30] sm:$0xff] }
  0xa7   : > { %1014 = vmatpush3.bf16.msra.mxu0 %v1011_v16  ;;  %1044 = vmatprep.subr.bf16.mxu1 %v1043_v32 }
  0xa8   : > { %1016 = vmatprep.subr.bf16.mxu0 %v1015_v24 }
  0xaa   : > { %1046 = vmatpush3.bf16.msra.mxu1 %v1043_v32 }
  0xab   : > { %1018 = vmatpush3.bf16.msra.mxu0 %v1015_v24  ;;  %1048 = vmatprep.subr.bf16.mxu1 %v1047_v38  ;;  %v507_v24 = vld [vmem:[#allocation2 + $0x18] sm:$0xff] }
  0xac   : > { %1020 = vmatprep.subr.bf16.mxu0 %v1019_v30 }
  0xae   : > { %1050 = vmatpush3.bf16.msra.mxu1 %v1047_v38 }
  0xaf   : > { %1022 = vmatpush3.bf16.msra.mxu0 %v1019_v30  ;;  %1052 = vmatprep.subr.bf16.mxu1 %v1051_v43  ;;  %v509_v30 = vld [vmem:[#allocation2 + $0x28] sm:$0xff] }
  0xb0   : > { %1024 = vmatprep.subr.bf16.mxu0 %v1023_v36 }
  0xb2   : > { %1054 = vmatpush3.bf16.msra.mxu1 %v1051_v43  ;;  %v854_v43 = vld [vmem:[%s1926_s16] ss:$0 sm:$0xff] (!%p853_p2) }
  0xb3   : > { %1026 = vmatpush3.bf16.msra.mxu0 %v1023_v36  ;;  %1056 = vmatprep.subr.bf16.mxu1 %v1055_v46  ;;  %v511_v36 = vld [vmem:[#allocation2 + $0x38] sm:$0xff] }
  0xb4   : > { %1028 = vmatprep.subr.bf16.mxu0 %v1027_v42 }
  0xb6   : > { %1058 = vmatpush3.bf16.msra.mxu1 %v1055_v46 }
  0xb7   : > { %1030 = vmatpush3.bf16.msra.mxu0 %v1027_v42  ;;  %1060 = vmatprep.subr.bf16.mxu1 %v1059_v56 }
  0xba   : > { %944 = vmatmul.mubr.f32.vlgmr.msra.gmra.mrb[0].mxu0 %v361_v47  ;;  %1062 = vmatpush3.bf16.msra.mxu1 %v1059_v56 }
  0xbb   : > { %946 = vmatprep.mubr.f32.mxu0 %v362_v48 }
  0xbe   : > { %947 = vmatmul.mubr.f32.gmra.mrb[2].mxu0 %v363_v49 }
  0xbf   : > { %949 = vmatprep.mubr.f32.mxu0 %v364_v50 }
  0xc2   : > { %950 = vmatmul.mubr.f32.gmra.mrb[4].mxu0 %v365_v51 }
  0xc3   : > { %952 = vmatprep.mubr.f32.mxu0 %v366_v52 }
  0xc6   : > { %953 = vmatmul.mubr.f32.gmra.mrb[6].mxu0 %v367_v53 }
 0x18d   : > { %v945_v58 = vpop.f32.mrb[0].mxu0 }
 0x18e   : > { %v463_v59 = vadd.f32 %v945_v58, %v852_v57  ;;  %v457_v60 = vpop.f32.mrb[1].mxu0 }
 0x18f   : > { %v458_v61 = vadd.f32 %v852_v57, %v457_v60 }
 0x190   : > { %v497_v0 = vmax.f32 %v463_v59, 0.0 }
 0x191   : > { %v948_v62 = vpop.f32.mrb[2].mxu0  ;;  %v496_v63 = vmax.f32 %v458_v61, 0.0 }
 0x192   : > { %v473_v1 = vadd.f32 %v948_v62, %v852_v57  ;;  %v467_v2 = vpop.f32.mrb[3].mxu0 }
 0x193   : > { %v468_v3 = vadd.f32 %v852_v57, %v467_v2  ;;  %987 = vmatprep.mubr.f32.mxu1 %v496_v63 }
 0x194   : > { %988 = vmatmul.mubr.f32.vlgmr.msra.gmra.mrb[0].mxu1 %v497_v0  ;;  %v499_v6 = vmax.f32 %v473_v1, 0.0 }
 0x195   : > { %v498_v4 = vmax.f32 %v468_v3, 0.0  ;;  %v951_v5 = vpop.f32.mrb[4].mxu0 }
 0x196   : > { %v483_v7 = vadd.f32 %v951_v5, %v852_v57  ;;  %v477_v8 = vpop.f32.mrb[5].mxu0 }
 0x197   : > { %v478_v9 = vadd.f32 %v852_v57, %v477_v8  ;;  %990 = vmatprep.mubr.f32.mxu1 %v498_v4 }
 0x198   : > { %991 = vmatmul.mubr.f32.gmra.mrb[2].mxu1 %v499_v6  ;;  %v501_v12 = vmax.f32 %v483_v7, 0.0 }
 0x199   : > { %v500_v10 = vmax.f32 %v478_v9, 0.0  ;;  %v954_v11 = vpop.f32.mrb[6].mxu0 }
 0x19a   : > { %v493_v13 = vadd.f32 %v954_v11, %v852_v57  ;;  %v487_v14 = vpop.f32.mrb[7].mxu0 }
 0x19b   : > { %v488_v15 = vadd.f32 %v852_v57, %v487_v14  ;;  %993 = vmatprep.mubr.f32.mxu1 %v500_v10 }
 0x19c   : > { %994 = vmatmul.mubr.f32.gmra.mrb[4].mxu1 %v501_v12  ;;  %v503_v17 = vmax.f32 %v493_v13, 0.0 }
 0x19d   : > { %v502_v16 = vmax.f32 %v488_v15, 0.0 }
 0x19f   : > { %996 = vmatprep.mubr.f32.mxu1 %v502_v16 }
 0x1a0   : > { %997 = vmatmul.mubr.f32.gmra.mrb[6].mxu1 %v503_v17 }
 0x267   : > { %v989_v20 = vpop.f32.mrb[0].mxu1 }
 0x268   : > { %v634_v21 = vadd.f32 %v989_v20, %v505_v18  ;;  %v594_v22 = vpop.f32.mrb[1].mxu1 }
 0x269   : > { %v633_v23 = vadd.f32 %v594_v22, %v504_v19 }
 0x26a   : > { %642 = vst [vmem:[#allocation2 + $0x8] sm:$0xff] %v634_v21 }
 0x26b   : > { %641 = vst [vmem:[#allocation2] sm:$0xff] %v633_v23  ;;  %v992_v26 = vpop.f32.mrb[2].mxu1 }
 0x26c   : > { %v636_v27 = vadd.f32 %v992_v26, %v507_v24  ;;  %v604_v28 = vpop.f32.mrb[3].mxu1 }
 0x26d   : > { %v635_v29 = vadd.f32 %v604_v28, %v506_v25 }
 0x26e   : > { %644 = vst [vmem:[#allocation2 + $0x18] sm:$0xff] %v636_v27 }
 0x26f   : > { %643 = vst [vmem:[#allocation2 + $0x10] sm:$0xff] %v635_v29  ;;  %v995_v32 = vpop.f32.mrb[4].mxu1 }
 0x270   : > { %v638_v33 = vadd.f32 %v995_v32, %v509_v30  ;;  %v614_v34 = vpop.f32.mrb[5].mxu1 }
 0x271   : > { %v637_v35 = vadd.f32 %v614_v34, %v508_v31  ;;  %652 = sbr.rel (%p853_p2) target bundleno = 642 (0x282), region = 60  ;;  %v654_v44 = vld [vmem:[#allocation2 + $0x8] sm:$0xff] (!%p853_p2) }
 0x272   : > { %646 = vst [vmem:[#allocation2 + $0x28] sm:$0xff] %v638_v33  ;;  %v653_v42 = vld [vmem:[#allocation2] sm:$0xff] (!%p853_p2)  ;;  %v669_v46 = vadd.f32 (!%p853_p2), %v854_v43, %v654_v44 }
 0x273   : > { %645 = vst [vmem:[#allocation2 + $0x20] sm:$0xff] %v637_v35  ;;  %v998_v38 = vpop.f32.mrb[6].mxu1  ;;  %v668_v45 = vadd.f32 (!%p853_p2), %v854_v43, %v653_v42 }
 0x274   : > { %v640_v39 = vadd.f32 %v998_v38, %v511_v36  ;;  %v624_v40 = vpop.f32.mrb[7].mxu1  ;;  %677 = vst [vmem:[%s1742_s20 + $0x8] sm:$0xff] (!%p853_p2), %v669_v46 }
 0x275   : > { %v639_v41 = vadd.f32 %v624_v40, %v510_v37  ;;  %v656_v48 = vld [vmem:[#allocation2 + $0x18] sm:$0xff] (!%p853_p2)  ;;  %676 = vst [vmem:[%s1742_s20] sm:$0xff] (!%p853_p2), %v668_v45 }
 0x276   : > { %648 = vst [vmem:[#allocation2 + $0x38] sm:$0xff] %v640_v39  ;;  %v655_v47 = vld [vmem:[#allocation2 + $0x10] sm:$0xff] (!%p853_p2)  ;;  %v671_v51 = vadd.f32 (!%p853_p2), %v854_v43, %v656_v48 }
 0x277   : > { %647 = vst [vmem:[#allocation2 + $0x30] sm:$0xff] %v639_v41  ;;  %v670_v50 = vadd.f32 (!%p853_p2), %v854_v43, %v655_v47 }
 0x278   : > { %679 = vst [vmem:[%s1742_s20 + $0x18] sm:$0xff] %v671_v51 }
 0x279   : > { %v658_v53 = vld [vmem:[#allocation2 + $0x28] sm:$0xff]  ;;  %678 = vst [vmem:[%s1742_s20 + $0x10] sm:$0xff] %v670_v50 }
 0x27a   : > { %v657_v49 = vld [vmem:[#allocation2 + $0x20] sm:$0xff]  ;;  %v673_v56 = vadd.f32 %v854_v43, %v658_v53 }
 0x27b   : > { %v672_v52 = vadd.f32 %v854_v43, %v657_v49 }
 0x27c   : > { %681 = vst [vmem:[%s1742_s20 + $0x28] sm:$0xff] %v673_v56 }
 0x27d   : > { %v660_v55 = vld [vmem:[#allocation2 + $0x38] sm:$0xff]  ;;  %680 = vst [vmem:[%s1742_s20 + $0x20] sm:$0xff] %v672_v52 }
 0x27e   : > { %v659_v54 = vld [vmem:[#allocation2 + $0x30] sm:$0xff]  ;;  %v675_v58 = vadd.f32 %v854_v43, %v660_v55 }
 0x27f   : > { %v674_v57 = vadd.f32 %v854_v43, %v659_v54 }
 0x280   : > { %683 = vst [vmem:[%s1742_s20 + $0x38] sm:$0xff] %v675_v58 }
 0x281   : > { %682 = vst [vmem:[%s1742_s20 + $0x30] sm:$0xff] %v674_v57 }
 0x282 PF: > { %s1927_s24 = sld [smem:[#allocation15_spill]]  ;;  %s698_s8 = sshll.u32 %s1742_s20, 4  ;;  %s1809_s8 = int_to_ptr.vmem [resolvable:$true] %s698_s8 }
 0x283   : > { %s1928_s6 = sld [smem:[#allocation23_spill]]  ;;  %s685_s23 = scalar_lea.sflag [#allocation5], %s1714_s1 }
 0x284   : > { %s1271_s4 = scalar_lea.vmem %s1809_s8, 1024  ;;  %p1929_p11 = scmp.ne.s32.totalorder %s1914_s14, 0 }
 0x285   : > { %p1272_p13 = scmp.ne.s32.totalorder %s1809_s8, %s1271_s4  ;;  %s1406_s15 = smov [#allocation9]  }
 0x286   : > { %s1275_s30 = sshll.u32 %s1406_s15, 4  ;;  %s1276_s30 = int_to_ptr.vmem [resolvable:$false] %s1275_s30 }
 0x287   : > { %p1273_p6 = pnand %p1272_p13, %p1929_p11  ;;  %s1277_s13 = scalar_lea.vmem %s1276_s30, 2048 }
 0x288   : > { %s862_s27 = sshll.u32 %s1927_s24, 10  ;;  %p1278_p1 = scmp.lt.s32.totalorder %s1809_s8, %s1276_s30 }
 0x289   : > { %s1806_s7 = scalar_lea.hbm %s1928_s6, %s862_s27  ;;  %p1274_p5 = pneg %p1273_p6 }
 0x28a   : > { %p1279_p0 = scmp.lt.s32.totalorder %s1277_s13, %s1271_s4 }
 0x28c   : > { %p1280_p9 = por %p1279_p0, %p1278_p1 }
 0x28e   : > { %p1281_p12 = pnand %p1280_p9, %p1274_p5 }
 0x290   : > { %1284 = shalt.err (!%p1281_p12)
}
 0x291   : > { %s1285_s12 = scalar_lea.hbm %s1806_s7, 1024  ;;  %s1289_s17 = scalar_lea.hbm %s1928_s6, 2048 }
 0x292   : > { %p1286_p3 = scmp.ne.s32.totalorder %s1806_s7, %s1285_s12  ;;  %p1290_p8 = scmp.lt.u32.totalorder %s1806_s7, %s1928_s6 }
 0x293   : > { %p1291_p10 = scmp.lt.u32.totalorder %s1289_s17, %s1285_s12  ;;  %p1293_p13 = scmp.lt.u32.totalorder %s1285_s12, %s1806_s7 }
 0x294   : > { %p1287_p4 = pnand %p1286_p3, %p1929_p11 }
 0x295   : > { %p1292_p2 = por %p1291_p10, %p1290_p8 }
 0x296   : > { %p1288_p7 = pneg %p1287_p4 }
 0x297   : > { %p1294_p6 = por %p1293_p13, %p1292_p2 }
 0x299   : > { %p1295_p5 = pnand %p1294_p6, %p1288_p7 }
 0x29b   : > { %1298 = shalt.err (!%p1295_p5)
}
 0x29c   : > { %s1407_s18 = smov 128   ;;  %s1408_s16 = smov 8  }
 0x29d   : > { %1069 = dma.vmem_to_hbm [thread:$0]  (%p1929_p11), %s1809_s8, 1024, %s1806_s7, %s685_s23, %s1407_s18, %s1407_s18, %s1408_s16  }
 0x29e PF: > { %p1086_p1 = scmp.ge.s32.totalorder %s1397_s28, 2  ;;  %s713_s24 = sand.u32 1, %s1369_s21  }
 0x29f   : > { %p1930_p0 = scmp.ne.s32.totalorder %s1916_s5, 0  ;;  %s714_s27 = scalar_lea.sflag [#allocation5], %s713_s24 }
 0x2a1   : > { %p1082_p9 = pnand %p1086_p1, %p1930_p0 }
 0x2a3   : > { %1352 = dma.done.wait (!%p1082_p9), %s714_s27, 1024  }
 0x2a4   : > { %1354 = vsyncadd (!%p1082_p9), %s714_s27, 4294966272  ;;  %s24_s28 = sadd.s32 1, %s1397_s28   ;;  %s1931_s11 = sld [smem:[#allocation13_spill]] }
 0x2a5   : > { %p21_p12 = scmp.ge.s32.totalorder %s24_s28, 6   ;;  %s1932_s20 = sld [smem:[#allocation18_spill]] }
 0x2a6   : > { %s1933_s14 = sld [smem:[#allocation14_spill]]  ;;  %s1934_s23 = sld [smem:[#allocation20_spill]] }
 0x2a7   : > { %s1935_s25 = sld [smem:[#allocation16_spill]]  ;;  %s1936_s1 = sld [smem:[#allocation17_spill]] }
 0x2a8   : > { %s1937_s27 = sld [smem:[#allocation19_spill]]  ;;  %s1938_s18 = smov %s1361_s19 }
 0x2a9   : > { %s1940_s21 = smov %s1373_s22  ;;  %s1942_s24 = smov %s1389_s26 }
 0x2aa   : > { %s1939_s19 = smov %s1931_s11  ;;  %23 = sbr.rel (!%p21_p12) target bundleno = 15 (0xf), region = 120 }
 0x2ac   : > { %s1941_s22 = smov %s1933_s14 }
 0x2ad   : > { %s1943_s26 = smov %s1936_s1 }
 0x2b1   :  { %719 = vsyncpa [#allocation4], 1 }
 0x2b2   :  { %721 = vsyncpa [#allocation4 + $0x1], 1 }
 0x2b3   :  { %722 = vsyncpa [#allocation7], 1 }
 0x2b4   :  { %724 = vsyncpa [#allocation7 + $0x1], 1 }
 0x2b5   :  { %725 = vsyncpa [#allocation5], 1 }
 0x2b6   :  { %727 = vsyncpa [#allocation5 + $0x1], 1 }

</bundles_post_ra>
